<compile_context>
chip_gen: v7x
topology: tpu7x:2x2x1
jax: 0.10.0
libtpu: 0.0.40
codegen_flags: <defaults>
</compile_context>

<pallas_src>
import jax
import jax.numpy as jnp
from jax import lax
from jax.experimental import pallas as pl
from jax.experimental.pallas import tpu as pltpu


def _anyhead_kernel(x_ref, w_ref, b_ref, o_ref):
    # x_ref: (TN, HW, C)   activation tile (f32 or bf16; upcast below)
    # w_ref: (NC_pad, C)   nn.Linear weight, rows zero-padded, pre-scaled by 1/HW
    # b_ref: (1, NC_pad)   bias row, zero-padded
    # o_ref: (TN, NC_pad)  output tile (lane-dense)
    x = x_ref[...].astype(jnp.float32)              # upcast once; f32 accumulation
    # Global average pool: sublane-axis sum on the VPU (1/HW folded into w_ref).
    pooled = jnp.sum(x, axis=1)                     # (TN, C), C stays lane-dense
    # Classifier: contract C against dim 1 of the (NC_pad, C) weight — trans-B
    # matmul on the MXU, no transposed weight copy needed.
    out = lax.dot_general(
        pooled, w_ref[...],
        dimension_numbers=(((1,), (1,)), ((), ())),
        preferred_element_type=jnp.float32)         # (TN, NC_pad)
    o_ref[...] = (out + b_ref[...]).astype(o_ref.dtype)


def _pick_block_n(n, hw, c, itemsize, vmem_budget_bytes):
    """Largest batch tile whose double-buffered input block fits the budget."""
    per_row = hw * c * itemsize
    tn = max(1, vmem_budget_bytes // (2 * per_row))
    tn = min(tn, n)
    if n >= 8:
        # Keep the (TN, NC_pad) output tile sublane-aligned (multiple of 8).
        tn = max(8, (tn // 8) * 8)
    else:
        tn = n  # block dim equal to the full array dim is always legal
    return int(tn)


def anyhead_forward(x_nchw, weight, bias, *, vmem_budget_bytes=8 * 1024 * 1024):
    """AnyHead forward. x_nchw: (N, C, H, W); weight: (NC, C) as nn.Linear; bias: (NC,)."""
    n, c, h, w = x_nchw.shape
    nc = weight.shape[0]
    hw = h * w

    # Channels-last view for the kernel: (N, HW, C).  Single XLA transpose pass;
    # free if the upstream network already produces channels-last activations.
    x_nhwc = jnp.transpose(x_nchw.reshape(n, c, hw), (0, 2, 1))

    # Pad classes to a lane-dense multiple of 128 and fold the 1/HW mean scale
    # into the weight so the in-kernel reduction is a pure sum.  (Tiny (NC, C) ops.)
    nc_pad = ((nc + 127) // 128) * 128
    inv_hw = 1.0 / float(hw)
    w_p = jnp.zeros((nc_pad, c), jnp.float32).at[:nc, :].set(
        weight.astype(jnp.float32) * inv_hw)
    b_p = jnp.zeros((1, nc_pad), jnp.float32).at[0, :nc].set(
        bias.astype(jnp.float32))

    tn = _pick_block_n(n, hw, c, x_nhwc.dtype.itemsize, vmem_budget_bytes)
    grid_n = pl.cdiv(n, tn)

    out_padded = pl.pallas_call(
        _anyhead_kernel,
        out_shape=jax.ShapeDtypeStruct((n, nc_pad), x_nchw.dtype),
        grid_spec=pltpu.PrefetchScalarGridSpec(
            num_scalar_prefetch=0,
            grid=(grid_n,),
            in_specs=[
                pl.BlockSpec((tn, hw, c), lambda i: (i, 0, 0)),   # batch-tiled input
                pl.BlockSpec((nc_pad, c), lambda i: (0, 0)),      # resident weight
                pl.BlockSpec((1, nc_pad), lambda i: (0, 0)),      # resident bias
            ],
            out_specs=pl.BlockSpec((tn, nc_pad), lambda i: (i, 0)),
        ),
        compiler_params=pltpu.CompilerParams(
            # Batch tiles are independent -> megacore sharding on v7x.
            dimension_semantics=("parallel",),
            # Safe on v5e/v6e/v7x; raise (64-96 MiB) on v5e/v6e for bigger tiles.
            vmem_limit_bytes=32 * 1024 * 1024,
        ),
    )(x_nhwc, w_p, b_p)

    return out_padded[:, :nc]   # drop lane padding of the class dimension


def reference_forward(x_nchw, weight, bias):
    pooled = jnp.mean(x_nchw.astype(jnp.float32), axis=(2, 3))       # (N, C)
    return pooled @ weight.astype(jnp.float32).T + bias.astype(jnp.float32)


if __name__ == "__main__":
    # Small shapes consistent with AnyHead: batch=2, w_in=32 channels, 16x16 spatial,
    # nc=8 classes.
    N, W_IN, H, W, NC = 2, 32, 16, 16, 8

    key = jax.random.PRNGKey(0)
    kx, kw, kb = jax.random.split(key, 3)
    x = jax.random.normal(kx, (N, W_IN, H, W), dtype=jnp.float32)
    fc_weight = jax.random.normal(kw, (NC, W_IN), dtype=jnp.float32) * 0.05
    fc_bias = jax.random.normal(kb, (NC,), dtype=jnp.float32) * 0.01

    # f32 activations.
    out = jax.block_until_ready(anyhead_forward(x, fc_weight, fc_bias))
    ref = reference_forward(x, fc_weight, fc_bias)
    assert out.shape == (N, NC)
    assert jnp.allclose(out, ref, atol=1e-4, rtol=1e-4), float(jnp.max(jnp.abs(out - ref)))

    # bf16 activations: half the DMA bytes; kernel upcasts and accumulates in f32.
    x_bf16 = x.astype(jnp.bfloat16)
    out_bf16 = jax.block_until_ready(anyhead_forward(x_bf16, fc_weight, fc_bias))
    ref_bf16 = reference_forward(x_bf16.astype(jnp.float32), fc_weight, fc_bias)
    assert out_bf16.shape == (N, NC)
    assert jnp.allclose(out_bf16.astype(jnp.float32), ref_bf16, atol=2e-2, rtol=2e-2)

    print("KERNEL_OK")
</pallas_src>

<mosaic_0001>
module attributes {stable_mosaic.version = 11 : i64} {
  func.func @_anyhead_kernel(%arg0: i32, %arg1: memref<2x256x32xf32, #tpu.memory_space<vmem>>, %arg2: memref<128x32xf32, #tpu.memory_space<vmem>>, %arg3: memref<1x128xf32, #tpu.memory_space<vmem>>, %arg4: memref<2x128xf32, #tpu.memory_space<vmem>>) attributes {dimension_semantics = [#tpu.dimension_semantics<parallel>], iteration_bounds = array<i64: 1>, scalar_prefetch = 0 : i64, scratch_operands = 0 : i64, tpu.core_type = #tpu.core_type<tc>, window_params = [{transform_indices = @transform_0, window_bounds = array<i64: 2, 256, 32>}, {pipeline_mode = #tpu.pipeline_mode<synchronous>, transform_indices = @transform_1, window_bounds = array<i64: 128, 32>}, {pipeline_mode = #tpu.pipeline_mode<synchronous>, transform_indices = @transform_2, window_bounds = array<i64: 1, 128>}, {transform_indices = @transform_3, window_bounds = array<i64: 2, 128>}]} {
    %c0 = arith.constant 0 : index
    %c0_0 = arith.constant 0 : index
    %c0_1 = arith.constant 0 : index
    %0 = vector.load %arg1[%c0, %c0_0, %c0_1] : memref<2x256x32xf32, #tpu.memory_space<vmem>>, vector<2x256x32xf32>
    %cst = arith.constant dense<0.000000e+00> : vector<2x32xf32>
    %1 = vector.multi_reduction <add>, %0, %cst [1] : vector<2x256x32xf32> to vector<2x32xf32>
    %c0_2 = arith.constant 0 : index
    %c0_3 = arith.constant 0 : index
    %2 = vector.load %arg2[%c0_2, %c0_3] : memref<128x32xf32, #tpu.memory_space<vmem>>, vector<128x32xf32>
    %cst_4 = arith.constant dense<0.000000e+00> : vector<2x128xf32>
    %3 = tpu.matmul %1, %2, %cst_4 {dimension_numbers = #tpu.dot_dimension_numbers<[1], [1], [0], [0], [0, 0, 1, 0], [], []>} : vector<2x32xf32>, vector<128x32xf32>, vector<2x128xf32> -> vector<2x128xf32>
    %c0_5 = arith.constant 0 : index
    %c0_6 = arith.constant 0 : index
    %4 = vector.load %arg3[%c0_5, %c0_6] : memref<1x128xf32, #tpu.memory_space<vmem>>, vector<1x128xf32>
    %5 = vector.broadcast %4 : vector<1x128xf32> to vector<2x128xf32>
    %6 = arith.addf %3, %5 : vector<2x128xf32>
    %c0_7 = arith.constant 0 : index
    %c0_8 = arith.constant 0 : index
    %7 = vector.load %arg4[%c0_7, %c0_8] : memref<2x128xf32, #tpu.memory_space<vmem>>, vector<2x128xf32>
    tpu.vector_store %arg4[%c0_7, %c0_8], %6 {strides = array<i32>} : memref<2x128xf32, #tpu.memory_space<vmem>>, vector<2x128xf32>,
    return
  }
  func.func @transform_0(%arg0: i32) -> (i32, i32, i32) {
    %c0_i32 = arith.constant 0 : i32
    %c0_i32_0 = arith.constant 0 : i32
    %c0_i32_1 = arith.constant 0 : i32
    return %arg0, %c0_i32, %c0_i32_0 : i32, i32, i32
  }
  func.func @transform_1(%arg0: i32) -> (i32, i32) {
    %c0_i32 = arith.constant 0 : i32
    %c0_i32_0 = arith.constant 0 : i32
    %c0_i32_1 = arith.constant 0 : i32
    return %c0_i32, %c0_i32_0 : i32, i32
  }
  func.func @transform_2(%arg0: i32) -> (i32, i32) {
    %c0_i32 = arith.constant 0 : i32
    %c0_i32_0 = arith.constant 0 : i32
    %c0_i32_1 = arith.constant 0 : i32
    return %c0_i32, %c0_i32_0 : i32, i32
  }
  func.func @transform_3(%arg0: i32) -> (i32, i32) {
    %c0_i32 = arith.constant 0 : i32
    %c0_i32_0 = arith.constant 0 : i32
    return %arg0, %c0_i32 : i32, i32
  }
}

</mosaic_0001>

<bundles_post_ra>
// kernel: tpu_custom_call.1
= control target key start
LH: loop header
LB: loop body
LE: loop exit
PB: predicated region body
PF: predicated region fallthrough
CT: control target
= control target key end

     0   :  { %vm79_vm0 = vcmask 261120   ;;  %v510_v2 = vmov 0.0|0.0   ;;  %vm511_vm2 = vmmov 0   ;;  %v512_v5 = vmov 0.0   ;;  %s884_s0 = inlined_call_operand.vmem [shape: f32[2,256,32], index: 0, kind: input, shape index: {}]   ;;  %s885_s1 = inlined_call_operand.vmem [shape: f32[128,32], index: 1, kind: input, shape index: {}]   ;;  %s886_s2 = inlined_call_operand.vmem [shape: f32[1,128], index: 2, kind: input, shape index: {}]   ;;  %s887_s3 = inlined_call_operand.hbm [shape: f32[2,128], index: 3, kind: output, shape index: {}]  }
   0x1   :  { %v218_v0 = vld [vmem:[%s885_s1] sm:$0xff]  ;;  %v219_v1 = vld [vmem:[%s885_s1 + $0x8] sm:$0xff]  ;;  %450 = vmatprep.subr.bf16.mxu0 %v510_v2  ;;  %vm543_vm1 = vmpackc.low %vm79_vm0, %vm79_vm0  ;;  %447 = vmatprep.mubr.msk.f32.mxu0 %vm511_vm2, %v512_v5 }
   0x2   :  { %v451_v3 = vpack.c.bf16 %v219_v1, %v218_v0  ;;  %v220_v6 = vld [vmem:[%s885_s1 + $0x10] sm:$0xff]  ;;  %v221_v7 = vld [vmem:[%s885_s1 + $0x18] sm:$0xff]  ;;  %v15_v8 = vld [vmem:[%s884_s0] sm:$0xff] }
   0x3   :  { %v16_v9 = vld [vmem:[%s884_s0 + $0x8] sm:$0xff]  ;;  %v17_v10 = vld [vmem:[%s884_s0 + $0x10] sm:$0xff]  ;;  %v18_v11 = vld [vmem:[%s884_s0 + $0x18] sm:$0xff]  ;;  %v80_v12 = vsel %vm79_vm0, %v15_v8, 0.0  ;;  %v455_v13 = vpack.c.bf16 %v221_v7, %v220_v6 }
   0x4   :  { %453 = vmatpush3.bf16.xpose.msk.msra.mxu0 %vm543_vm1, %v451_v3  ;;  %v81_v14 = vsel %vm79_vm0, %v16_v9, 0.0  ;;  %v83_v15 = vsel %vm79_vm0, %v17_v10, 0.0  ;;  %v19_v16 = vld [vmem:[%s884_s0 + $0x20] sm:$0xff]  ;;  %v85_v18 = vsel %vm79_vm0, %v18_v11, 0.0  ;;  %v20_v19 = vld [vmem:[%s884_s0 + $0x28] sm:$0xff]  ;;  %v21_v24 = vld [vmem:[%s884_s0 + $0x30] sm:$0xff] }
   0x5   :  { %454 = vmatprep.subr.bf16.mxu0 %v510_v2  ;;  %v82_v17 = vadd.f32 %v81_v14, %v80_v12  ;;  %v87_v21 = vsel %vm79_vm0, %v19_v16, 0.0  ;;  %v222_v22 = vld [vmem:[%s885_s1 + $0x20] sm:$0xff]  ;;  %v223_v23 = vld [vmem:[%s885_s1 + $0x28] sm:$0xff]  ;;  %v89_v26 = vsel %vm79_vm0, %v20_v19, 0.0  ;;  %v22_v27 = vld [vmem:[%s884_s0 + $0x38] sm:$0xff]  ;;  %v91_v30 = vsel %vm79_vm0, %v21_v24, 0.0 }
   0x6   :  { %v459_v29 = vpack.c.bf16 %v223_v23, %v222_v22  ;;  %v23_v31 = vld [vmem:[%s884_s0 + $0x40] sm:$0xff]  ;;  %v48_v33 = vld [vmem:[%s884_s0 + $0x108] sm:$0xff]  ;;  %v49_v35 = vld [vmem:[%s884_s0 + $0x110] sm:$0xff]  ;;  %v93_v37 = vsel %vm79_vm0, %v22_v27, 0.0 }
   0x7   :  { %v84_v20 = vadd.f32 %v83_v15, %v82_v17  ;;  %v47_v32 = vld [vmem:[%s884_s0 + $0x100] sm:$0xff]  ;;  %v50_v36 = vld [vmem:[%s884_s0 + $0x118] sm:$0xff]  ;;  %v150_v39 = vsel %vm79_vm0, %v48_v33, 0.0  ;;  %v24_v40 = vld [vmem:[%s884_s0 + $0x48] sm:$0xff]  ;;  %v152_v44 = vsel %vm79_vm0, %v49_v35, 0.0  ;;  %v95_v46 = vsel %vm79_vm0, %v23_v31, 0.0 }
   0x8   :  { %v149_v38 = vsel %vm79_vm0, %v47_v32, 0.0  ;;  %v51_v41 = vld [vmem:[%s884_s0 + $0x120] sm:$0xff]  ;;  %v224_v45 = vld [vmem:[%s885_s1 + $0x30] sm:$0xff]  ;;  %v154_v47 = vsel %vm79_vm0, %v50_v36, 0.0  ;;  %v225_v48 = vld [vmem:[%s885_s1 + $0x38] sm:$0xff]  ;;  %v97_v53 = vsel %vm79_vm0, %v24_v40, 0.0 }
   0x9   :  { %v86_v25 = vadd.f32 %v85_v18, %v84_v20  ;;  %v151_v43 = vadd.f32 %v150_v39, %v149_v38  ;;  %v25_v49 = vld [vmem:[%s884_s0 + $0x50] sm:$0xff]  ;;  %v52_v50 = vld [vmem:[%s884_s0 + $0x128] sm:$0xff]  ;;  %v156_v54 = vsel %vm79_vm0, %v51_v41, 0.0  ;;  %v26_v55 = vld [vmem:[%s884_s0 + $0x58] sm:$0xff]  ;;  %v463_v59 = vpack.c.bf16 %v225_v48, %v224_v45 }
   0xa   :  { %v53_v56 = vld [vmem:[%s884_s0 + $0x130] sm:$0xff]  ;;  %v99_v60 = vsel %vm79_vm0, %v25_v49, 0.0  ;;  %v158_v61 = vsel %vm79_vm0, %v52_v50, 0.0  ;;  %v27_v62 = vld [vmem:[%s884_s0 + $0x60] sm:$0xff]  ;;  %v54_v63 = vld [vmem:[%s884_s0 + $0x138] sm:$0xff]  ;;  %v101_v3 = vsel %vm79_vm0, %v26_v55, 0.0 }
   0xb   :  { %v88_v28 = vadd.f32 %v87_v21, %v86_v25  ;;  %v153_v52 = vadd.f32 %v152_v44, %v151_v43  ;;  %v160_v5 = vsel %vm79_vm0, %v53_v56, 0.0  ;;  %v28_v6 = vld [vmem:[%s884_s0 + $0x68] sm:$0xff]  ;;  %v55_v7 = vld [vmem:[%s884_s0 + $0x140] sm:$0xff]  ;;  %v103_v12 = vsel %vm79_vm0, %v27_v62, 0.0  ;;  %v29_v14 = vld [vmem:[%s884_s0 + $0x70] sm:$0xff] }
   0xc   :  { %457 = vmatpush3.bf16.xpose.msk.msra.mxu0 %vm543_vm1, %v455_v13  ;;  %v226_v10 = vld [vmem:[%s885_s1 + $0x40] sm:$0xff]  ;;  %v227_v11 = vld [vmem:[%s885_s1 + $0x48] sm:$0xff]  ;;  %v162_v13 = vsel %vm79_vm0, %v54_v63, 0.0 }
   0xd   :  { %458 = vmatprep.subr.bf16.mxu0 %v510_v2  ;;  %v90_v34 = vadd.f32 %v89_v26, %v88_v28  ;;  %v155_v58 = vadd.f32 %v154_v47, %v153_v52  ;;  %v56_v15 = vld [vmem:[%s884_s0 + $0x148] sm:$0xff] }
   0xf   :  { %v92_v42 = vadd.f32 %v91_v30, %v90_v34  ;;  %v157_v1 = vadd.f32 %v156_v54, %v155_v58 }
  0x11   :  { %v94_v51 = vadd.f32 %v93_v37, %v92_v42  ;;  %v159_v9 = vadd.f32 %v158_v61, %v157_v1 }
  0x13   :  { %v96_v57 = vadd.f32 %v95_v46, %v94_v51  ;;  %v161_v17 = vadd.f32 %v160_v5, %v159_v9 }
  0x14   :  { %461 = vmatpush3.bf16.xpose.msk.msra.mxu0 %vm543_vm1, %v459_v29 }
  0x15   :  { %462 = vmatprep.subr.bf16.mxu0 %v510_v2  ;;  %v98_v0 = vadd.f32 %v97_v53, %v96_v57 }
  0x17   :  { %v100_v8 = vadd.f32 %v99_v60, %v98_v0 }
  0x19   :  { %v102_v16 = vadd.f32 %v101_v3, %v100_v8 }
  0x1c   :  { %465 = vmatpush3.bf16.xpose.msk.msra.mxu0 %vm543_vm1, %v463_v59 }
  0x1d   :  { %466 = vmatprep.subr.bf16.mxu0 %v510_v2 }
  0x1e   :  { %8 = vsyncpa [#allocation3], 0  ;;  %v105_v18 = vsel %vm79_vm0, %v28_v6, 0.0  ;;  %v164_v19 = vsel %vm79_vm0, %v55_v7, 0.0  ;;  %v30_v20 = vld [vmem:[%s884_s0 + $0x78] sm:$0xff]  ;;  %v57_v21 = vld [vmem:[%s884_s0 + $0x150] sm:$0xff]  ;;  %v104_v22 = vadd.f32 %v103_v12, %v102_v16  ;;  %v163_v23 = vadd.f32 %v162_v13, %v161_v17 }
  0x1f   :  { %v467_v24 = vpack.c.bf16 %v227_v11, %v226_v10  ;;  %v107_v25 = vsel %vm79_vm0, %v29_v14, 0.0  ;;  %v166_v26 = vsel %vm79_vm0, %v56_v15, 0.0  ;;  %v31_v27 = vld [vmem:[%s884_s0 + $0x80] sm:$0xff]  ;;  %v58_v28 = vld [vmem:[%s884_s0 + $0x158] sm:$0xff]  ;;  %v109_v31 = vsel %vm79_vm0, %v30_v20, 0.0  ;;  %v32_v33 = vld [vmem:[%s884_s0 + $0x88] sm:$0xff] }
  0x20   :  { %v106_v29 = vadd.f32 %v105_v18, %v104_v22  ;;  %v165_v30 = vadd.f32 %v164_v19, %v163_v23  ;;  %v168_v32 = vsel %vm79_vm0, %v57_v21, 0.0  ;;  %v59_v34 = vld [vmem:[%s884_s0 + $0x160] sm:$0xff]  ;;  %v228_v37 = vld [vmem:[%s885_s1 + $0x50] sm:$0xff]  ;;  %v111_v38 = vsel %vm79_vm0, %v31_v27, 0.0  ;;  %v229_v40 = vld [vmem:[%s885_s1 + $0x58] sm:$0xff] }
  0x21   :  { %v170_v39 = vsel %vm79_vm0, %v58_v28, 0.0  ;;  %v33_v41 = vld [vmem:[%s884_s0 + $0x90] sm:$0xff]  ;;  %v60_v42 = vld [vmem:[%s884_s0 + $0x168] sm:$0xff]  ;;  %v113_v45 = vsel %vm79_vm0, %v32_v33, 0.0  ;;  %v172_v46 = vsel %vm79_vm0, %v59_v34, 0.0  ;;  %v34_v47 = vld [vmem:[%s884_s0 + $0x98] sm:$0xff]  ;;  %v471_v51 = vpack.c.bf16 %v229_v40, %v228_v37 }
  0x22   :  { %v108_v35 = vadd.f32 %v107_v25, %v106_v29  ;;  %v167_v36 = vadd.f32 %v166_v26, %v165_v30  ;;  %v61_v48 = vld [vmem:[%s884_s0 + $0x170] sm:$0xff]  ;;  %v115_v52 = vsel %vm79_vm0, %v33_v41, 0.0  ;;  %v174_v53 = vsel %vm79_vm0, %v60_v42, 0.0  ;;  %v35_v54 = vld [vmem:[%s884_s0 + $0xa0] sm:$0xff]  ;;  %v62_v55 = vld [vmem:[%s884_s0 + $0x178] sm:$0xff] }
  0x23   :  { %v117_v58 = vsel %vm79_vm0, %v34_v47, 0.0  ;;  %v176_v59 = vsel %vm79_vm0, %v61_v48, 0.0  ;;  %v36_v60 = vld [vmem:[%s884_s0 + $0xa8] sm:$0xff]  ;;  %v63_v61 = vld [vmem:[%s884_s0 + $0x180] sm:$0xff]  ;;  %v119_v1 = vsel %vm79_vm0, %v35_v54, 0.0  ;;  %v178_v3 = vsel %vm79_vm0, %v62_v55, 0.0 }
  0x24   :  { %469 = vmatpush3.bf16.xpose.msk.msra.mxu0 %vm543_vm1, %v467_v24  ;;  %v110_v43 = vadd.f32 %v109_v31, %v108_v35  ;;  %v169_v44 = vadd.f32 %v168_v32, %v167_v36  ;;  %v230_v0 = vld [vmem:[%s885_s1 + $0x60] sm:$0xff]  ;;  %v231_v5 = vld [vmem:[%s885_s1 + $0x68] sm:$0xff]  ;;  %v37_v6 = vld [vmem:[%s884_s0 + $0xb0] sm:$0xff]  ;;  %v121_v10 = vsel %vm79_vm0, %v36_v60, 0.0  ;;  %v180_v11 = vsel %vm79_vm0, %v63_v61, 0.0 }
  0x25   :  { %470 = vmatprep.subr.bf16.mxu0 %v510_v2  ;;  %v64_v7 = vld [vmem:[%s884_s0 + $0x188] sm:$0xff]  ;;  %v38_v12 = vld [vmem:[%s884_s0 + $0xb8] sm:$0xff]  ;;  %v65_v13 = vld [vmem:[%s884_s0 + $0x190] sm:$0xff]  ;;  %v475_v16 = vpack.c.bf16 %v231_v5, %v230_v0  ;;  %v123_v17 = vsel %vm79_vm0, %v37_v6, 0.0  ;;  %vm243_vm3 = vcmask 1041409  }
  0x26   :  { %v112_v49 = vadd.f32 %v111_v38, %v110_v43  ;;  %v171_v50 = vadd.f32 %v170_v39, %v169_v44  ;;  %v182_v18 = vsel %vm79_vm0, %v64_v7, 0.0  ;;  %v39_v19 = vld [vmem:[%s884_s0 + $0xc0] sm:$0xff]  ;;  %v66_v20 = vld [vmem:[%s884_s0 + $0x198] sm:$0xff]  ;;  %v125_v23 = vsel %vm79_vm0, %v38_v12, 0.0  ;;  %v40_v25 = vld [vmem:[%s884_s0 + $0xc8] sm:$0xff] }
  0x27   :  { %v184_v24 = vsel %vm79_vm0, %v65_v13, 0.0  ;;  %v67_v26 = vld [vmem:[%s884_s0 + $0x1a0] sm:$0xff]  ;;  %v232_v29 = vld [vmem:[%s885_s1 + $0x70] sm:$0xff]  ;;  %v127_v30 = vsel %vm79_vm0, %v39_v19, 0.0  ;;  %v186_v31 = vsel %vm79_vm0, %v66_v20, 0.0  ;;  %v233_v32 = vld [vmem:[%s885_s1 + $0x78] sm:$0xff] }
  0x28   :  { %v114_v56 = vadd.f32 %v113_v45, %v112_v49  ;;  %v173_v57 = vadd.f32 %v172_v46, %v171_v50  ;;  %v41_v33 = vld [vmem:[%s884_s0 + $0xd0] sm:$0xff]  ;;  %v68_v34 = vld [vmem:[%s884_s0 + $0x1a8] sm:$0xff]  ;;  %v129_v37 = vsel %vm79_vm0, %v40_v25, 0.0  ;;  %v188_v38 = vsel %vm79_vm0, %v67_v26, 0.0  ;;  %v43_v45 = vld [vmem:[%s884_s0 + $0xe0] sm:$0xff]  ;;  %s513_s1 = smov [#allocation2]  }
  0x29   :  { %v69_v39 = vld [vmem:[%s884_s0 + $0x1b0] sm:$0xff]  ;;  %v479_v42 = vpack.c.bf16 %v233_v32, %v232_v29  ;;  %v131_v43 = vsel %vm79_vm0, %v41_v33, 0.0  ;;  %v190_v44 = vsel %vm79_vm0, %v68_v34, 0.0  ;;  %v70_v46 = vld [vmem:[%s884_s0 + $0x1b8] sm:$0xff]  ;;  %v135_v55 = vsel %vm79_vm0, %v43_v45, 0.0  ;;  %s372_s10 = sshll.u32 %s513_s1, 4  ;;  %s373_s10 = int_to_ptr.vmem [resolvable:$true] %s372_s10 }
  0x2a   :  { %v116_v62 = vadd.f32 %v115_v52, %v114_v56  ;;  %v175_v63 = vadd.f32 %v174_v53, %v173_v57  ;;  %v192_v50 = vsel %vm79_vm0, %v69_v39, 0.0  ;;  %v71_v52 = vld [vmem:[%s884_s0 + $0x1c0] sm:$0xff]  ;;  %v194_v56 = vsel %vm79_vm0, %v70_v46, 0.0  ;;  %v45_v57 = vld [vmem:[%s884_s0 + $0xf0] sm:$0xff]  ;;  %v46_v4 = vld [vmem:[%s884_s0 + $0xf8] sm:$0xff]  ;;  %s486_s11 = scalar_lea.vmem %s373_s10, 32  ;;  %p491_p1 = scmp.lt.s32.totalorder %s373_s10, %s373_s10 }
  0x2b   :  { %v74_v6 = vld [vmem:[%s884_s0 + $0x1d8] sm:$0xff]  ;;  %v77_v19 = vld [vmem:[%s884_s0 + $0x1f0] sm:$0xff]  ;;  %p487_p0 = scmp.ne.s32.totalorder %s373_s10, %s486_s11  ;;  %p492_p2 = scmp.lt.s32.totalorder %s486_s11, %s486_s11 }
  0x2c   :  { %473 = vmatpush3.bf16.xpose.msk.msra.mxu0 %vm543_vm1, %v471_v51  ;;  %v118_v8 = vadd.f32 %v117_v58, %v116_v62  ;;  %v177_v9 = vadd.f32 %v176_v59, %v175_v63  ;;  %v44_v51 = vld [vmem:[%s884_s0 + $0xe8] sm:$0xff]  ;;  %v196_v62 = vsel %vm79_vm0, %v71_v52, 0.0  ;;  %v73_v63 = vld [vmem:[%s884_s0 + $0x1d0] sm:$0xff]  ;;  %v208_v26 = vsel %vm79_vm0, %v77_v19, 0.0 }
  0x2d   :  { %474 = vmatprep.subr.bf16.mxu0 %v510_v2  ;;  %v72_v58 = vld [vmem:[%s884_s0 + $0x1c8] sm:$0xff]  ;;  %v137_v61 = vsel %vm79_vm0, %v44_v51, 0.0  ;;  %p493_p3 = por %p492_p2, %p491_p1 }
  0x2e   :  { %v120_v14 = vadd.f32 %v119_v1, %v118_v8  ;;  %v179_v15 = vadd.f32 %v178_v3, %v177_v9  ;;  %v139_v3 = vsel %vm79_vm0, %v45_v57, 0.0  ;;  %v198_v5 = vsel %vm79_vm0, %v72_v58, 0.0 }
  0x2f   :  { %v141_v9 = vsel %vm79_vm0, %v46_v4, 0.0  ;;  %p494_p4 = pnand %p493_p3, %p487_p0 }
  0x30   :  { %v122_v21 = vadd.f32 %v121_v10, %v120_v14  ;;  %v181_v22 = vadd.f32 %v180_v11, %v179_v15  ;;  %v200_v10 = vsel %vm79_vm0, %v73_v63, 0.0  ;;  %v75_v11 = vld [vmem:[%s884_s0 + $0x1e0] sm:$0xff]  ;;  %v202_v14 = vsel %vm79_vm0, %v74_v6, 0.0  ;;  %v76_v15 = vld [vmem:[%s884_s0 + $0x1e8] sm:$0xff] }
  0x32   :  { %v124_v27 = vadd.f32 %v123_v17, %v122_v21  ;;  %v183_v28 = vadd.f32 %v182_v18, %v181_v22  ;;  %v204_v18 = vsel %vm79_vm0, %v75_v11, 0.0  ;;  %v206_v22 = vsel %vm79_vm0, %v76_v15, 0.0 }
  0x34   :  { %477 = vmatpush3.bf16.xpose.msk.msra.mxu0 %vm543_vm1, %v475_v16  ;;  %v126_v35 = vadd.f32 %v125_v23, %v124_v27  ;;  %v185_v36 = vadd.f32 %v184_v24, %v183_v28  ;;  %v78_v23 = vld [vmem:[%s884_s0 + $0x1f8] sm:$0xff] }
  0x35   :  { %478 = vmatprep.subr.bf16.mxu0 %v510_v2  ;;  %v42_v2 = vld [vmem:[%s884_s0 + $0xd8] sm:$0xff]  ;;  %v210_v28 = vsel %vm79_vm0, %v78_v23, 0.0 }
  0x36   :  { %v128_v40 = vadd.f32 %v127_v30, %v126_v35  ;;  %v187_v41 = vadd.f32 %v186_v31, %v185_v36  ;;  %v133_v49 = vsel %vm79_vm0, %v42_v2, 0.0 }
  0x38   :  { %v130_v47 = vadd.f32 %v129_v37, %v128_v40  ;;  %v189_v48 = vadd.f32 %v188_v38, %v187_v41  ;;  %v380_v41 = vld [vmem:[%s886_s2] ss:$0 sm:$0xff] }
  0x3a   :  { %v132_v53 = vadd.f32 %v131_v43, %v130_v47  ;;  %v191_v54 = vadd.f32 %v190_v44, %v189_v48 }
  0x3c   :  { %481 = vmatpush3.bf16.xpose.msk.msra.mxu0 %vm543_vm1, %v479_v42  ;;  %v134_v59 = vadd.f32 %v133_v49, %v132_v53  ;;  %v193_v60 = vadd.f32 %v192_v50, %v191_v54 }
  0x3e   :  { %v136_v0 = vadd.f32 %v135_v55, %v134_v59  ;;  %v195_v1 = vadd.f32 %v194_v56, %v193_v60 }
  0x40   :  { %v138_v7 = vadd.f32 %v137_v61, %v136_v0  ;;  %v197_v8 = vadd.f32 %v196_v62, %v195_v1 }
  0x42   :  { %v140_v12 = vadd.f32 %v139_v3, %v138_v7  ;;  %v199_v13 = vadd.f32 %v198_v5, %v197_v8 }
  0x44   :  { %v142_v16 = vadd.f32 %v141_v9, %v140_v12  ;;  %v201_v17 = vadd.f32 %v200_v10, %v199_v13 }
  0x46   :  { %v143_v20 = vrot.slane %v142_v16, 4  ;;  %v203_v21 = vadd.f32 %v202_v14, %v201_v17 }
  0x48   :  { %v144_v24 = vadd.f32 %v143_v20, %v142_v16  ;;  %v205_v25 = vadd.f32 %v204_v18, %v203_v21 }
  0x4a   :  { %v207_v27 = vadd.f32 %v206_v22, %v205_v25  ;;  %v145_v29 = vrot.slane %v144_v24, 2 }
  0x4c   :  { %v209_v30 = vadd.f32 %v208_v26, %v207_v27  ;;  %v146_v32 = vadd.f32 %v145_v29, %v144_v24 }
  0x4e   :  { %v211_v31 = vadd.f32 %v210_v28, %v209_v30  ;;  %v147_v35 = vrot.slane %v146_v32, 1 }
  0x50   :  { %v212_v33 = vrot.slane %v211_v31, 4  ;;  %v148_v38 = vadd.f32 %v147_v35, %v146_v32 }
  0x52   :  { %v213_v34 = vadd.f32 %v212_v33, %v211_v31 }
  0x54   :  { %v214_v36 = vrot.slane %v213_v34, 2 }
  0x56   :  { %v215_v37 = vadd.f32 %v214_v36, %v213_v34 }
  0x58   :  { %v216_v2 = vrot.slane %v215_v37, 1 }
  0x5a   :  { %v217_v39 = vadd.f32 %v216_v2, %v215_v37 }
  0x5c   :  { %v244_v40 = vsel %vm243_vm3, %v217_v39, %v148_v38 }
  0x5d   :  { %448 = vmatmul.mubr.msk.f32.vlgmr.msra.gmra.mrb[0].mxu0 %vm79_vm0, %v244_v40 }
 0x130   :  { %v361_v42 = vpop.f32.mrb[0].mxu0 }
 0x131   :  { %v362_v43 = vadd.f32 %v380_v41, %v361_v42  ;;  %v449_v44 = vpop.f32.mrb[1].mxu0 }
 0x133   :  { %365 = vst [vmem:[#allocation2] sm:$0x3] %v362_v43 }
 0x134   :  { %497 = shalt.err (!%p494_p4)
}
 0x135   :  { %s498_s14 = scalar_lea.hbm %s887_s3, 32 }
 0x136   :  { %p499_p5 = scmp.ne.s32.totalorder %s887_s3, %s498_s14  ;;  %p502_p6 = scmp.lt.u32.totalorder %s498_s14, %s887_s3 }
 0x138   :  { %p504_p7 = pnand %p502_p6, %p499_p5 }
 0x13a   :  { %507 = shalt.err (!%p504_p7)
}
 0x13b   :  { %375 = dma.vmem_to_hbm [thread:$0]  %s373_s10, 32, %s887_s3, [#allocation3]  }
 0x13c   :  { %508 = dma.done.wait [#allocation3], 32  }
 0x13d   :  { %509 = vsyncadd [#allocation3], 4294967264 }
 0x13e   :  { %379 = vsyncpa [#allocation3], 1 }

</bundles_post_ra>
